<compile_context>
chip_gen: v7x
topology: tpu7x:2x2x1
jax: 0.10.0
libtpu: 0.0.40
codegen_flags: <defaults>
</compile_context>

<pallas_src>
from functools import lru_cache

import numpy as np
from numpy import sin, cos, tan, pi, arcsin, arctan

import jax
import jax.numpy as jnp
from jax.experimental import pallas as pl
from jax.experimental.pallas import tpu as pltpu


# ---------------------------------------------------------------------------
# Sphere kernel-sampling-pattern generation (pure numpy, ported verbatim).
# ---------------------------------------------------------------------------
def get_xy(delta_phi, delta_theta):
    return np.array([
        [(-tan(delta_theta), 1 / cos(delta_theta) * tan(delta_phi)),
         (0, tan(delta_phi)),
         (tan(delta_theta), 1 / cos(delta_theta) * tan(delta_phi))],
        [(-tan(delta_theta), 0),
         (1, 1),
         (tan(delta_theta), 0)],
        [(-tan(delta_theta), -1 / cos(delta_theta) * tan(delta_phi)),
         (0, -tan(delta_phi)),
         (tan(delta_theta), -1 / cos(delta_theta) * tan(delta_phi))]])


def cal_index(h, w, img_r, img_c):
    phi = -((img_r + 0.5) / h * pi - pi / 2)
    theta = (img_c + 0.5) / w * 2 * pi - pi
    delta_phi = pi / h
    delta_theta = 2 * pi / w
    xys = get_xy(delta_phi, delta_theta)
    x = xys[..., 0]
    y = xys[..., 1]
    rho = np.sqrt(x ** 2 + y ** 2)
    v = arctan(rho)
    with np.errstate(invalid='ignore', divide='ignore'):
        new_phi = arcsin(cos(v) * sin(phi) + y * sin(v) * cos(phi) / rho)
        new_theta = theta + arctan(
            x * sin(v) / (rho * cos(phi) * cos(v) - y * sin(phi) * sin(v)))
    new_r = (-new_phi + pi / 2) * h / pi - 0.5
    new_c = (new_theta + pi) * w / 2 / pi - 0.5
    new_c = (new_c + w) % w
    new_result = np.stack([new_r, new_c], axis=-1)
    new_result[1, 1] = (img_r, img_c)
    return new_result


def gen_filters_coordinates(h, w, stride=1):
    co = np.array([[cal_index(h, w, i, j) for j in range(0, w, stride)]
                   for i in range(0, h, stride)])
    return np.ascontiguousarray(co.transpose([4, 0, 1, 2, 3]))


def gen_grid_coordinates(h, w, stride=1):
    coordinates = gen_filters_coordinates(h, w, stride).copy()
    coordinates[0] = coordinates[0] * 2 / h - 1
    coordinates[1] = coordinates[1] * 2 / w - 1
    coordinates = coordinates[::-1]
    coordinates = coordinates.transpose(1, 3, 2, 4, 0)
    sz = coordinates.shape
    coordinates = coordinates.reshape(1, sz[0] * sz[1], sz[2] * sz[3], sz[4])
    return coordinates.copy()


# ---------------------------------------------------------------------------
# Build the dense bilinear-sampling matrix directly at PADDED shape via a
# sparse COO scatter (no (3H,3W,H,W) float64 intermediate).
#   ST[k, h*W+w, i*Wo+j] = bilinear weight of input pixel (h,w) for kernel tap
#   k at output location (i,j).  Matches torch.grid_sample(bilinear, zeros,
#   align_corners=False).
# ---------------------------------------------------------------------------
def _build_sampling_matrix_padded(H, W, stride, HWp, Pp):
    grid = gen_grid_coordinates(H, W, stride)[0]          # (Ho*3, Wo*3, 2) (x,y)
    Hg, Wg, _ = grid.shape
    Ho, Wo = Hg // 3, Wg // 3
    gx, gy = grid[..., 0], grid[..., 1]
    ix = ((gx + 1.0) * W - 1.0) / 2.0                     # align_corners=False
    iy = ((gy + 1.0) * H - 1.0) / 2.0
    ix0 = np.floor(ix).astype(np.int64)
    iy0 = np.floor(iy).astype(np.int64)
    ix1, iy1 = ix0 + 1, iy0 + 1

    gi, gj = np.meshgrid(np.arange(Hg), np.arange(Wg), indexing='ij')
    tap = (gi % 3) * 3 + (gj % 3)                         # kernel tap 0..8
    p_out = (gi // 3) * Wo + (gj // 3)                    # output flat index

    ST = np.zeros((9, HWp, Pp), dtype=np.float32)
    corners = [
        (ix0, iy0, (ix1 - ix) * (iy1 - iy)),
        (ix1, iy0, (ix - ix0) * (iy1 - iy)),
        (ix0, iy1, (ix1 - ix) * (iy - iy0)),
        (ix1, iy1, (ix - ix0) * (iy - iy0)),
    ]
    for xi, yi, wgt in corners:
        valid = (xi >= 0) & (xi < W) & (yi >= 0) & (yi < H)   # zero padding
        src = yi[valid] * W + xi[valid]
        np.add.at(ST, (tap[valid], src, p_out[valid]),
                  wgt[valid].astype(np.float32))
    return ST, Ho, Wo


@lru_cache(maxsize=None)
def _get_st_device(H, W, stride, HWp, Pp):
    """Memoized, device-resident bf16 sampling matrix at padded shape."""
    st_np, Ho, Wo = _build_sampling_matrix_padded(H, W, stride, HWp, Pp)
    st = jnp.asarray(st_np, dtype=jnp.bfloat16)
    return st, Ho, Wo


# ---------------------------------------------------------------------------
# Pallas kernels.
# ---------------------------------------------------------------------------
def _sphere_pool_kernel_fullk(x_ref, st_ref, o_ref):
    """Grid (m, p, tap): one matmul per step, tap-max folded into o_ref."""
    t = pl.program_id(2)
    part = jnp.dot(x_ref[...], st_ref[...], preferred_element_type=jnp.float32)

    @pl.when(t == 0)
    def _():
        o_ref[...] = part

    @pl.when(t != 0)
    def _():
        o_ref[...] = jnp.maximum(o_ref[...], part)


def _sphere_pool_kernel_ktiled(x_ref, st_ref, o_ref, kacc_ref):
    """Grid (m, p, tap, ktile): K-tiled accumulation, tap-max into o_ref."""
    t = pl.program_id(2)
    k = pl.program_id(3)
    nk = pl.num_programs(3)

    part = jnp.dot(x_ref[...], st_ref[...], preferred_element_type=jnp.float32)

    @pl.when(k == 0)
    def _():
        kacc_ref[...] = part

    @pl.when(k != 0)
    def _():
        kacc_ref[...] = kacc_ref[...] + part

    last_k = k == nk - 1

    @pl.when(last_k & (t == 0))
    def _():
        o_ref[...] = kacc_ref[...]

    @pl.when(last_k & (t != 0))
    def _():
        o_ref[...] = jnp.maximum(o_ref[...], kacc_ref[...])


# ---------------------------------------------------------------------------
# Wrapper.
# ---------------------------------------------------------------------------
def _round_up(x, m):
    return ((x + m - 1) // m) * m


def _vmem_capacity_bytes():
    try:
        cap = int(pltpu.get_tpu_info().vmem_capacity_bytes)
        if cap > 0:
            return cap
    except Exception:
        pass
    return 64 * 1024 * 1024      # conservative: v7x per-TC VMEM


def sphere_max_pool2d(x, stride=1, block_m=256, block_p=2048):
    """x: (N, C, H, W) float -> (N, C, ceil(H/stride), ceil(W/stride))."""
    N, C, H, W = x.shape
    M = N * C
    HW = H * W
    Ho = -(-H // stride)
    Wo = -(-W // stride)
    P = Ho * Wo

    vmem_cap = _vmem_capacity_bytes()
    vmem_budget = int(vmem_cap * 0.65)                 # tile footprint budget
    vmem_limit = int(min(int(vmem_cap * 0.80), 110 * 1024 * 1024))

    # ---- tiling (all lane/sublane aligned; bf16 -> 16-row sublane packing) --
    bm = min(block_m, _round_up(M, 16))
    Mp = _round_up(M, bm)
    tp = min(block_p, _round_up(P, 128))
    Pp = _round_up(P, tp)

    # Guarantee >= 2 parallel (m, p) blocks when possible (v7x has 2 TCs).
    if (Mp // bm) * (Pp // tp) < 2:
        if Pp >= 256:
            tp = Pp // 2 if (Pp // 2) % 128 == 0 else 128
        elif Mp >= 32 and (Mp // 2) % 16 == 0:
            bm = Mp // 2

    def _fits(tk_, tp_, with_acc):
        f = (2 * bm * tk_ * 2          # x block, double-buffered, bf16
             + 2 * tk_ * tp_ * 2       # ST block, double-buffered, bf16
             + 2 * bm * tp_ * 4)       # output block, f32
        if with_acc:
            f += bm * tp_ * 4          # K-tile accumulator scratch
        return f <= vmem_budget

    HWp128 = _round_up(HW, 128)
    ktiled = False
    tk = HWp128
    # Prefer the full contraction (no K axis, no accumulator scratch).
    while (not _fits(tk, tp, False) and tp > 256
           and (tp // 2) % 128 == 0 and Pp % (tp // 2) == 0):
        tp //= 2
    if not _fits(tk, tp, False):
        # Fall back to streaming the contraction dimension in K-tiles.
        ktiled = True
        tk = min(2048, HWp128)
        while tk > 128 and not _fits(tk, tp, True):
            tk = max(128, tk // 2)
    HWp = _round_up(HW, tk)

    m_blocks = Mp // bm
    p_blocks = Pp // tp
    k_blocks = HWp // tk

    # ---- operands: bf16 inputs, zero-padded to the tile grid ---------------
    xf = x.reshape(M, HW).astype(jnp.bfloat16)
    xf = jnp.pad(xf, ((0, Mp - M), (0, HWp - HW)))

    st, Ho_b, Wo_b = _get_st_device(H, W, stride, HWp, Pp)
    assert (Ho_b, Wo_b) == (Ho, Wo)

    # ---- advisory cost hint for the XLA scheduler ---------------------------
    flops = 2 * Mp * HWp * Pp * 9
    bytes_accessed = (m_blocks * 9 * HWp * Pp * 2    # ST streamed per m-block
                      + Mp * HWp * 2                 # x
                      + Mp * Pp * 4)                 # output writeback
    cost = pl.CostEstimate(flops=int(flops), transcendentals=0,
                           bytes_accessed=int(bytes_accessed))

    if not ktiled:
        grid = (m_blocks, p_blocks, 9)
        out_flat = pl.pallas_call(
            _sphere_pool_kernel_fullk,
            out_shape=jax.ShapeDtypeStruct((Mp, Pp), jnp.float32),
            grid_spec=pltpu.PrefetchScalarGridSpec(
                num_scalar_prefetch=0,
                grid=grid,
                in_specs=[
                    pl.BlockSpec((bm, tk), lambda m, p, t: (m, 0)),
                    pl.BlockSpec((None, tk, tp), lambda m, p, t: (t, 0, p)),
                ],
                out_specs=pl.BlockSpec((bm, tp), lambda m, p, t: (m, p)),
                scratch_shapes=[],
            ),
            compiler_params=pltpu.CompilerParams(
                dimension_semantics=("parallel", "parallel", "arbitrary"),
                vmem_limit_bytes=vmem_limit,
            ),
            cost_estimate=cost,
        )(xf, st)
    else:
        grid = (m_blocks, p_blocks, 9, k_blocks)
        out_flat = pl.pallas_call(
            _sphere_pool_kernel_ktiled,
            out_shape=jax.ShapeDtypeStruct((Mp, Pp), jnp.float32),
            grid_spec=pltpu.PrefetchScalarGridSpec(
                num_scalar_prefetch=0,
                grid=grid,
                in_specs=[
                    pl.BlockSpec((bm, tk), lambda m, p, t, k: (m, k)),
                    pl.BlockSpec((None, tk, tp), lambda m, p, t, k: (t, k, p)),
                ],
                out_specs=pl.BlockSpec((bm, tp), lambda m, p, t, k: (m, p)),
                scratch_shapes=[pltpu.VMEM((bm, tp), jnp.float32)],
            ),
            compiler_params=pltpu.CompilerParams(
                dimension_semantics=("parallel", "parallel",
                                     "arbitrary", "arbitrary"),
                vmem_limit_bytes=vmem_limit,
            ),
            cost_estimate=cost,
        )(xf, st)

    return out_flat[:M, :P].reshape(N, C, Ho, Wo).astype(x.dtype)


# ---------------------------------------------------------------------------
# Pure-numpy reference (independent gather-based grid_sample + maxpool).
# ---------------------------------------------------------------------------
def _grid_sample_bilinear_np(x, grid):
    N, C, H, W = x.shape
    gx, gy = grid[..., 0], grid[..., 1]
    ix = ((gx + 1.0) * W - 1.0) / 2.0
    iy = ((gy + 1.0) * H - 1.0) / 2.0
    ix0 = np.floor(ix).astype(np.int64)
    iy0 = np.floor(iy).astype(np.int64)
    ix1, iy1 = ix0 + 1, iy0 + 1
    out = np.zeros((N, C) + gx.shape[1:], dtype=np.float64)
    nn = np.arange(N)[:, None, None, None]
    cc = np.arange(C)[None, :, None, None]
    for xi, yi, wgt in [(ix0, iy0, (ix1 - ix) * (iy1 - iy)),
                        (ix1, iy0, (ix - ix0) * (iy1 - iy)),
                        (ix0, iy1, (ix1 - ix) * (iy - iy0)),
                        (ix1, iy1, (ix - ix0) * (iy - iy0))]:
        valid = (xi >= 0) & (xi < W) & (yi >= 0) & (yi < H)
        xc = np.clip(xi, 0, W - 1)
        yc = np.clip(yi, 0, H - 1)
        vals = x[nn, cc, yc[:, None, :, :], xc[:, None, :, :]]
        out += vals * np.where(valid, wgt, 0.0)[:, None, :, :]
    return out


def _reference(x_np, stride=1):
    N, C, H, W = x_np.shape
    grid = np.repeat(gen_grid_coordinates(H, W, stride), N, axis=0)
    sampled = _grid_sample_bilinear_np(x_np.astype(np.float64), grid)
    Ho, Wo = grid.shape[1] // 3, grid.shape[2] // 3
    return sampled.reshape(N, C, Ho, 3, Wo, 3).max(axis=(3, 5)).astype(np.float32)


if __name__ == "__main__":
    key = jax.random.PRNGKey(0)
    N, C, H, W = 2, 4, 16, 16
    x = jax.random.normal(key, (N, C, H, W), dtype=jnp.float32)

    out = sphere_max_pool2d(x, stride=1)
    out = jax.block_until_ready(out)

    ref = _reference(np.asarray(x), stride=1)
    assert out.shape == ref.shape, (out.shape, ref.shape)
    # bf16 operands with f32 accumulation: relaxed tolerance vs. the f64 ref.
    np.testing.assert_allclose(np.asarray(out), ref, rtol=2e-2, atol=5e-2)
    print("KERNEL_OK")
</pallas_src>

<mosaic_0001>
module attributes {stable_mosaic.version = 11 : i64} {
  func.func @_sphere_pool_kernel_fullk(%arg0: i32, %arg1: i32, %arg2: i32, %arg3: memref<16x256xbf16, #tpu.memory_space<vmem>>, %arg4: memref<1x256x128xbf16, #tpu.memory_space<vmem>>, %arg5: memref<16x128xf32, #tpu.memory_space<vmem>>) attributes {dimension_semantics = [#tpu.dimension_semantics<parallel>, #tpu.dimension_semantics<parallel>, #tpu.dimension_semantics<arbitrary>], iteration_bounds = array<i64: 1, 2, 9>, scalar_prefetch = 0 : i64, scratch_operands = 0 : i64, tpu.core_type = #tpu.core_type<tc>, window_params = [{transform_indices = @transform_0, window_bounds = array<i64: 16, 256>}, {transform_indices = @transform_1, window_bounds = array<i64: 1, 256, 128>}, {transform_indices = @transform_2, window_bounds = array<i64: 16, 128>}]} {
    %c0 = arith.constant 0 : index
    %c0_0 = arith.constant 0 : index
    %0 = vector.load %arg3[%c0, %c0_0] : memref<16x256xbf16, #tpu.memory_space<vmem>>, vector<16x256xbf16>
    %c0_1 = arith.constant 0 : index
    %c0_2 = arith.constant 0 : index
    %c0_3 = arith.constant 0 : index
    %1 = vector.load %arg4[%c0_1, %c0_2, %c0_3] : memref<1x256x128xbf16, #tpu.memory_space<vmem>>, vector<1x256x128xbf16>
    %2 = vector.shape_cast %1 : vector<1x256x128xbf16> to vector<256x128xbf16>
    %cst = arith.constant dense<0.000000e+00> : vector<16x128xf32>
    %3 = tpu.matmul %0, %2, %cst {dimension_numbers = #tpu.dot_dimension_numbers<[1], [0], [0], [1], [0, 0, 1, 1], [], []>} : vector<16x256xbf16>, vector<256x128xbf16>, vector<16x128xf32> -> vector<16x128xf32>
    %c0_i32 = arith.constant 0 : i32
    %4 = arith.cmpi eq, %arg2, %c0_i32 : i32
    %5 = arith.extui %4 : i1 to i32
    %c0_i32_4 = arith.constant 0 : i32
    %6 = arith.cmpi ne, %5, %c0_i32_4 : i32
    scf.if %6 {
      %c0_7 = arith.constant 0 : index
      %c0_8 = arith.constant 0 : index
      %10 = vector.load %arg5[%c0_7, %c0_8] : memref<16x128xf32, #tpu.memory_space<vmem>>, vector<16x128xf32>
      tpu.vector_store %arg5[%c0_7, %c0_8], %3 {strides = array<i32>} : memref<16x128xf32, #tpu.memory_space<vmem>>, vector<16x128xf32>,
    } else {
    }
    %c0_i32_5 = arith.constant 0 : i32
    %7 = arith.cmpi ne, %arg2, %c0_i32_5 : i32
    %8 = arith.extui %7 : i1 to i32
    %c0_i32_6 = arith.constant 0 : i32
    %9 = arith.cmpi ne, %8, %c0_i32_6 : i32
    scf.if %9 {
      %c0_7 = arith.constant 0 : index
      %c0_8 = arith.constant 0 : index
      %10 = vector.load %arg5[%c0_7, %c0_8] : memref<16x128xf32, #tpu.memory_space<vmem>>, vector<16x128xf32>
      %11 = arith.maximumf %10, %3 : vector<16x128xf32>
      %c0_9 = arith.constant 0 : index
      %c0_10 = arith.constant 0 : index
      %12 = vector.load %arg5[%c0_9, %c0_10] : memref<16x128xf32, #tpu.memory_space<vmem>>, vector<16x128xf32>
      tpu.vector_store %arg5[%c0_9, %c0_10], %11 {strides = array<i32>} : memref<16x128xf32, #tpu.memory_space<vmem>>, vector<16x128xf32>,
    } else {
    }
    return
  }
  func.func @transform_0(%arg0: i32, %arg1: i32, %arg2: i32) -> (i32, i32) {
    %c0_i32 = arith.constant 0 : i32
    %c0_i32_0 = arith.constant 0 : i32
    return %arg0, %c0_i32 : i32, i32
  }
  func.func @transform_1(%arg0: i32, %arg1: i32, %arg2: i32) -> (i32, i32, i32) {
    %c0_i32 = arith.constant 0 : i32
    %c0_i32_0 = arith.constant 0 : i32
    return %arg2, %c0_i32, %arg1 : i32, i32, i32
  }
  func.func @transform_2(%arg0: i32, %arg1: i32, %arg2: i32) -> (i32, i32) {
    %c0_i32 = arith.constant 0 : i32
    return %arg0, %arg1 : i32, i32
  }
}

</mosaic_0001>

<bundles_post_ra>
// kernel: tpu_custom_call.1
= control target key start
LH: loop header
LB: loop body
LE: loop exit
PB: predicated region body
PF: predicated region fallthrough
CT: control target
= control target key end

     0   :  { %s1233_s0 = inlined_call_operand.hbm [shape: bf16[16,256], index: 0, kind: input, shape index: {}]   ;;  %s1234_s1 = inlined_call_operand.hbm [shape: bf16[9,256,256], index: 1, kind: input, shape index: {}]   ;;  %s1235_s2 = inlined_call_operand.hbm [shape: f32[16,256], index: 2, kind: output, shape index: {}]  }
   0x1   :  { %1247 = sst [smem:[#allocation15_spill]] %s1233_s0 }
   0x2   :  { %7 = vsyncpa [#allocation3], 0 }
   0x3   :  { %8 = vsyncpa [#allocation6], 0 }
   0x4   :  { %10 = vsyncpa [#allocation6 + $0x1], 0 }
   0x5   :  { %11 = vsyncpa [#allocation4], 0 }
   0x6   :  { %13 = vsyncpa [#allocation4 + $0x1], 0  ;;  %s939_s9 = smov 0   ;;  %s941_s10 = smov 0  }
   0x7   :  { %s943_s11 = smov 0   ;;  %s945_s12 = smov 0  }
   0x8   :  { %s947_s13 = smov 0   ;;  %s949_s14 = smov 0  }
   0x9   :  { %s951_s15 = smov 0   ;;  %s953_s16 = smov 0  }
   0xa   :  { %s955_s17 = smov 0   ;;  %s957_s18 = smov 0  }
   0xb   :  { %s959_s19 = smov 0  }
   0xc LB: > { %1248 = sst [smem:[#allocation11_spill]] %s904_s17  ;;  %s531_s20 = sadd.s32 4294967295, %s912_s19   ;;  %s912_s19 = sphi %s959_s19, %s19_s19   ;;  %s908_s18 = sphi %s957_s18, %s1281_s18   ;;  %s904_s17 = sphi %s955_s17, %s1272_s17   ;;  %s900_s16 = sphi %s953_s16, %s1280_s16   ;;  %s896_s15 = sphi %s951_s15, %s1271_s15   ;;  %s892_s14 = sphi %s949_s14, %s1279_s14   ;;  %s888_s13 = sphi %s947_s13, %s1278_s13   ;;  %s884_s12 = sphi %s945_s12, %s1277_s12   ;;  %s880_s11 = sphi %s943_s11, %s1276_s11   ;;  %s876_s10 = sphi %s941_s10, %s1275_s10   ;;  %s872_s9 = sphi %s939_s9, %s1274_s9  }
   0xd   : > { %s532_s21 = sadd.s32 4294967294, %s912_s19   ;;  %p80_p0 = scmp.ne.s32.totalorder %s892_s14, %s888_s13 }
   0xe   : > { %p81_p1 = scmp.eq.s32.totalorder %s912_s19, 0  ;;  %p86_p2 = scmp.ne.s32.totalorder %s888_s13, %s884_s12 }
   0xf   : > { %p999_p3 = scmp.eq.s32.totalorder %s531_s20, 0  ;;  %p111_p5 = scmp.ne.s32.totalorder %s880_s11, %s876_s10 }
  0x10   : > { %p1004_p4 = por %p81_p1, %p80_p0  ;;  %p112_p7 = scmp.eq.s32.totalorder %s531_s20, 17 }
  0x11   : > { %s1249_s23 = scalar_select %p999_p3, 1, 0 }
  0x12   : > { %p1012_p6 = por %p999_p3, %p86_p2  ;;  %p117_p8 = scmp.ne.s32.totalorder %s876_s10, %s872_s9 }
  0x13   : > { %p118_p9 = scmp.eq.s32.totalorder %s532_s21, 17  ;;  %p1018_p10 = por %p112_p7, %p111_p5 }
  0x14   : > { %s1251_s26 = scalar_select %p1012_p6, 1, 0 }
  0x15   : > { %s1252_s27 = scalar_select %p1018_p10, 1, 0 }
  0x16   : > { %p533_p11 = scmp.ge.s32.totalorder %s912_s19, 1  ;;  %p1023_p12 = por %p118_p9, %p117_p8 }
  0x17   : > { %p125_p13 = scmp.lt.s32.totalorder %s912_s19, 19  ;;  %s914_s30 = smov [#allocation2]  }
  0x18   : > { %s1253_s28 = scalar_select %p1023_p12, 1, 0 }
  0x19   : > { %p1028_p0 = pnand %p533_p11, %p125_p13  ;;  %s141_s3 = sshll.u32 %s914_s30, 4  ;;  %s142_s3 = int_to_ptr.vmem [resolvable:$true] %s141_s3 }
  0x1a   : > { %1254 = sst [smem:[#allocation12_spill]] %s1253_s28  ;;  %p610_p2 = scmp.lt.s32.totalorder %s912_s19, 18 }
  0x1b   : > { %s1255_s29 = scalar_select %p1028_p0, 1, 0 }
  0x1c   : > { %p597_p1 = pneg %p1028_p0  ;;  %p1043_p7 = pnand %p610_p2, %p1004_p4 }
  0x1d   : > { %s1258_s0 = sld [smem:[#allocation15_spill]] }
  0x1e   : > { %p1037_p5 = pnand %p597_p1, %p999_p3 }
  0x1f   : > { %s1257_s5 = scalar_select %p1043_p7, 1, 0 }
  0x20   : > { %p730_p9 = pneg %p1037_p5 }
  0x23   : > { %s728_s8 = scalar_lea.hbm %s1258_s0, 256 }
  0x24   : > { %p729_p8 = scmp.ne.s32.totalorder %s1258_s0, %s728_s8  ;;  %p735_p1 = scmp.lt.u32.totalorder %s728_s8, %s1258_s0 }
  0x26   : > { %p731_p11 = pnand %p730_p9, %p729_p8 }
  0x28   : > { %p732_p13 = pneg %p731_p11 }
  0x2a   : > { %p737_p4 = pnand %p735_p1, %p732_p13 }
  0x2c   : > { %740 = shalt.err (!%p737_p4)
}
  0x2d   : > { %s741_s25 = scalar_lea.vmem %s142_s3, 256  ;;  %p749_p6 = scmp.lt.s32.totalorder %s142_s3, %s142_s3 }
  0x2e   : > { %p742_p2 = scmp.ne.s32.totalorder %s142_s3, %s741_s25  ;;  %p750_p3 = scmp.lt.s32.totalorder %s741_s25, %s741_s25 }
  0x30   : > { %p744_p12 = pnand %p742_p2, %p730_p9  ;;  %p751_p0 = por %p750_p3, %p749_p6 }
  0x32   : > { %p745_p10 = pneg %p744_p12 }
  0x34   : > { %p752_p7 = pnand %p751_p0, %p745_p10 }
  0x36   : > { %755 = shalt.err (!%p752_p7)
}
  0x37   : > { %s1242_s6 = smov 128   ;;  %s916_s7 = smov 8  }
  0x38   : > { %600 = dma.hbm_to_vmem [thread:$0]  (!%p1037_p5), %s1258_s0, 256, %s142_s3, [#allocation3], %s1242_s6, %s1242_s6, %s916_s7  }
  0x39   : > { %s31_s20 = sadd.s32 1, %s904_s17  ;;  %s34_s21 = sadd.s32 1, %s908_s18 }
  0x3a   : > { %p32_p3 = scmp.ge.s32.totalorder %s31_s20, 9  ;;  %s155_s30 = sand.u32 1, %s892_s14  }
  0x3b   : > { %s536_s25 = sshll.u32 %s155_s30, 7  ;;  %s537_s22 = sshll.u32 %s904_s17, 6 }
  0x3c   : > { %s1283_s20 = smov (%p32_p3, %s31_s20), 0  ;;  %s1285_s21 = smov (!%p32_p3, %s34_s21), %s908_s18 }
  0x3d   : > { %1259 = sst [smem:[#allocation13_spill]] %s1283_s20  ;;  %s68_s4 = ssub.s32 %s904_s17, %s1283_s20 }
  0x3e   : > { %p36_p6 = scmp.ge.s32.totalorder %s1285_s21, 2  ;;  %s164_s24 = sadd.s32 %s908_s18, %s537_s22 }
  0x3f   : > { %s159_s3 = scalar_lea.vmem [#allocation5], %s536_s25  ;;  %s538_s8 = sshll.u32 %s164_s24, 6 }
  0x40   : > { %s167_s7 = sshll.u32 %s159_s3, 4  ;;  %s1287_s21 = smov (%p36_p6, %s1285_s21), 0  ;;  %s1077_s7 = int_to_ptr.vmem [resolvable:$true] %s167_s7 }
  0x41   : > { %1260 = sst [smem:[#allocation14_spill]] %s1287_s21  ;;  %s69_s12 = ssub.s32 %s908_s18, %s1287_s21 }
  0x42   : > { %s1084_s28 = scalar_lea.hbm %s1234_s1, %s538_s8  ;;  %s70_s22 = sor.u32 %s69_s12, %s68_s4 }
  0x43   : > { %p99_p10 = scmp.eq.s32.totalorder %s69_s12, 0  ;;  %p71_p12 = scmp.eq.s32.totalorder %s70_s22, 0 }
  0x44   : > { %s1261_s25 = sadd.s32 1, %s880_s11  ;;  %s1262_s20 = sadd.s32 1, %s892_s14 }
  0x45   : > { %s1089_s3 = scalar_select %p99_p10, %s880_s11, %s1261_s25  }
  0x46   : > { %s1094_s24 = scalar_select %p71_p12, %s892_s14, %s1262_s20  }
  0x47   : > { %s1096_s17 = scalar_lea.sflag [#allocation6], %s155_s30  ;;  %s756_s21 = scalar_lea.hbm %s1084_s28, 2048 }
  0x48   : > { %p757_p0 = scmp.ne.s32.totalorder %s1084_s28, %s756_s21  ;;  %p1263_p5 = scmp.ne.s32.totalorder %s1257_s5, 0 }
  0x49   : > { %s761_s4 = scalar_lea.hbm %s1234_s1, 36864  ;;  %p762_p11 = scmp.lt.u32.totalorder %s1084_s28, %s1234_s1 }
  0x4a   : > { %p758_p7 = pneg %p1263_p5  ;;  %p763_p13 = scmp.lt.u32.totalorder %s761_s4, %s756_s21 }
  0x4b   : > { %p765_p4 = scmp.lt.u32.totalorder %s756_s21, %s1084_s28 }
  0x4c   : > { %p759_p8 = pnand %p758_p7, %p757_p0  ;;  %p764_p1 = por %p763_p13, %p762_p11 }
  0x4e   : > { %p760_p9 = pneg %p759_p8  ;;  %p766_p2 = por %p765_p4, %p764_p1 }
  0x50   : > { %p767_p3 = pnand %p766_p2, %p760_p9 }
  0x52   : > { %770 = shalt.err (!%p767_p3)
}
  0x53   : > { %s771_s20 = scalar_lea.vmem %s1077_s7, 2048  ;;  %s917_s30 = smov [#allocation5]  }
  0x54   : > { %p772_p6 = scmp.ne.s32.totalorder %s1077_s7, %s771_s20  ;;  %s776_s22 = sshll.u32 %s917_s30, 4  ;;  %s777_s22 = int_to_ptr.vmem [resolvable:$false] %s776_s22 }
  0x55   : > { %s778_s25 = scalar_lea.vmem %s777_s22, 4096  ;;  %p779_p0 = scmp.lt.s32.totalorder %s1077_s7, %s777_s22 }
  0x56   : > { %p774_p10 = pnand %p772_p6, %p758_p7  ;;  %p780_p8 = scmp.lt.s32.totalorder %s778_s25, %s771_s20 }
  0x58   : > { %p775_p12 = pneg %p774_p10  ;;  %p781_p11 = por %p780_p8, %p779_p0 }
  0x5a   : > { %p782_p13 = pnand %p781_p11, %p775_p12 }
  0x5c   : > { %785 = shalt.err (!%p782_p13)
}
  0x5d   : > { %s918_s21 = smov 64   ;;  %s919_s0 = smov 4  }
  0x5e   : > { %s1264_s6 = smov 128   ;;  %p1265_p7 = scmp.ne.s32.totalorder %s1255_s29, 0 }
  0x5f   : > { %604 = dma.hbm_to_vmem [thread:$0]  (!%p1263_p5), %s1084_s28, 2048, %s1077_s7, %s1096_s17, %s1264_s6, %s918_s21, %s919_s0  }
  0x60   : > { %179 = sbr.rel (%p1265_p7) target bundleno = 396 (0x18c), region = 28  ;;  %p1266_p9 = scmp.ne.s32.totalorder (!%p1265_p7), %s1249_s23, 0 }
  0x67   : > { %859 = dma.done.wait (%p1266_p9), [#allocation3], 256  }
  0x68   : > { %861 = vsyncadd (%p1266_p9), [#allocation3], 4294967040  ;;  %s185_s4 = sand.u32 1, %s888_s13   ;;  %p1267_p1 = scmp.ne.s32.totalorder %s1251_s26, 0 }
  0x69   : > { %s541_s8 = sshll.u32 %s185_s4, 7  ;;  %s186_s12 = scalar_lea.sflag [#allocation6], %s185_s4 }
  0x6a   : > { %s1132_s20 = scalar_lea.vmem [#allocation5], %s541_s8 }
  0x6b   : > { %863 = dma.done.wait (%p1267_p1), %s186_s12, 2048  }
  0x6c   : > { %865 = vsyncadd (%p1267_p1), %s186_s12, 4294965248  ;;  %s207_s17 = sand.u32 1, %s876_s10   ;;  %v709_v0 = vld [vmem:[%s1132_s20 + $0x40] sm:$0xff]   ;;  %v711_v2 = vld [vmem:[%s1132_s20 + $0x48] sm:$0xff]   ;;  %p561_p5 = scmp.ne.s32.totalorder %s896_s15, 0 }
  0x6d   : > { %s1141_s23 = sshll.u32 %s207_s17, 4  ;;  %v710_v1 = vld [vmem:[%s1132_s20] sm:$0xff]   ;;  %567 = vmatprep.subr.bf16.mxu0 %v709_v0  ;;  %v712_v3 = vld [vmem:[%s1132_s20 + $0x8] sm:$0xff]   ;;  %v713_v4 = vld [vmem:[%s1132_s20 + $0x50] sm:$0xff]  }
  0x6e   : > { %568 = vmatpush3.bf16.msra.mxu0 %v710_v1  ;;  %v714_v5 = vld [vmem:[%s1132_s20 + $0x10] sm:$0xff]   ;;  %v715_v6 = vld [vmem:[%s1132_s20 + $0x58] sm:$0xff]   ;;  %v717_v8 = vld [vmem:[%s1132_s20 + $0x60] sm:$0xff]   ;;  %s209_s26 = scalar_lea.vmem [#allocation7], %s1141_s23 }
  0x6f   : > { %569 = vmatprep.subr.bf16.mxu0 %v711_v2  ;;  %v716_v7 = vld [vmem:[%s1132_s20 + $0x18] sm:$0xff]   ;;  %v718_v9 = vld [vmem:[%s1132_s20 + $0x20] sm:$0xff]   ;;  %v719_v10 = vld [vmem:[%s1132_s20 + $0x68] sm:$0xff]  }
  0x70   : > { %v727_v11 = vld [vmem:[#allocation2 + $0x4] ss:$8 sps:$4 sm:$0xff]   ;;  %v720_v12 = vld [vmem:[%s1132_s20 + $0x28] sm:$0xff]   ;;  %v725_v17 = vld [vmem:[#allocation2] ss:$8 sps:$4 sm:$0xff]  }
  0x71   : > { %385 = vmatprep.mubr.bf16.mxu0 %v727_v11  ;;  %v721_v13 = vld [vmem:[%s1132_s20 + $0x70] sm:$0xff]   ;;  %v723_v15 = vld [vmem:[%s1132_s20 + $0x78] sm:$0xff]  }
  0x72   : > { %570 = vmatpush3.bf16.msra.mxu0 %v712_v3  ;;  %v722_v14 = vld [vmem:[%s1132_s20 + $0x30] sm:$0xff]   ;;  %v724_v16 = vld [vmem:[%s1132_s20 + $0x38] sm:$0xff]  }
  0x73   : > { %571 = vmatprep.subr.bf16.mxu0 %v713_v4 }
  0x76   : > { %572 = vmatpush3.bf16.msra.mxu0 %v714_v5 }
  0x77   : > { %573 = vmatprep.subr.bf16.mxu0 %v715_v6 }
  0x7a   : > { %574 = vmatpush3.bf16.msra.mxu0 %v716_v7 }
  0x7b   : > { %575 = vmatprep.subr.bf16.mxu0 %v717_v8 }
  0x7e   : > { %576 = vmatpush3.bf16.msra.mxu0 %v718_v9 }
  0x7f   : > { %577 = vmatprep.subr.bf16.mxu0 %v719_v10 }
  0x82   : > { %578 = vmatpush3.bf16.msra.mxu0 %v720_v12 }
  0x83   : > { %579 = vmatprep.subr.bf16.mxu0 %v721_v13 }
  0x86   : > { %580 = vmatpush3.bf16.msra.mxu0 %v722_v14 }
  0x87   : > { %581 = vmatprep.subr.bf16.mxu0 %v723_v15 }
  0x8a   : > { %582 = vmatpush3.bf16.msra.mxu0 %v724_v16 }
  0x8d   : > { %386 = vmatmul.mubr.bf16.vlgmr.msra.gmra.mrb[0].mxu0 %v725_v17 }
 0x15e   : > { %397 = sbr.rel (%p561_p5) target bundleno = 359 (0x167), region = 40 }
 0x160   : > { %v583_v18 = vpop.f32.mrb[0].mxu0 }
 0x161   : > { %v584_v19 = vpop.f32.mrb[1].mxu0 }
 0x162   : > { %v585_v20 = vadd.f32 %v584_v19, %v583_v18  ;;  %v586_v21 = vpop.f32.mrb[2].mxu0 }
 0x163   : > { %v587_v22 = vpop.f32.mrb[3].mxu0 }
 0x164   : > { %v588_v23 = vadd.f32 %v587_v22, %v586_v21  ;;  %398 = vst [vmem:[%s209_s26] sm:$0xff] (!%p561_p5), %v585_v20 }
 0x166   : > { %399 = vst [vmem:[%s209_s26 + $0x8] sm:$0xff] %v588_v23 }
 0x167 PF: > { %p562_p4 = scmp.eq.s32.totalorder %s896_s15, 0 }
 0x169   : > { %403 = sbr.rel (%p562_p4) target bundleno = 369 (0x171), region = 44 }
 0x16d   : > { %v404_v24 = vld [vmem:[%s209_s26] sm:$0xff] (!%p562_p4)  ;;  %v405_v25 = vld [vmem:[%s209_s26 + $0x8] sm:$0xff] (!%p562_p4) }
 0x16e   : > { %v406_v26 = vmax.f32 (!%p562_p4), %v404_v24, %v585_v20  ;;  %v407_v27 = vmax.f32 (!%p562_p4), %v405_v25, %v588_v23 }
 0x170   : > { %408 = vst [vmem:[%s209_s26] sm:$0xff] %v406_v26  ;;  %409 = vst [vmem:[%s209_s26 + $0x8] sm:$0xff] %v407_v27 }
 0x171 PF: > { %s564_s28 = sshll.u32 %s900_s16, 7  ;;  %s426_s30 = sshll.u32 %s209_s26, 4  ;;  %s1168_s30 = int_to_ptr.vmem [resolvable:$true] %s426_s30 }
 0x172   : > { %s1166_s7 = scalar_lea.hbm %s1235_s2, %s564_s28  ;;  %s1172_s15 = scalar_lea.sflag [#allocation4], %s207_s17 }
 0x173   : > { %s786_s22 = scalar_lea.vmem %s1168_s30, 256  ;;  %p1268_p3 = scmp.ne.s32.totalorder %s1252_s27, 0 }
 0x174   : > { %p787_p2 = scmp.ne.s32.totalorder %s1168_s30, %s786_s22  ;;  %s920_s16 = smov [#allocation7]  }
 0x175   : > { %s790_s25 = sshll.u32 %s920_s16, 4  ;;  %s791_s25 = int_to_ptr.vmem [resolvable:$false] %s790_s25 }
 0x176   : > { %p788_p6 = pnand %p787_p2, %p1268_p3  ;;  %s792_s21 = scalar_lea.vmem %s791_s25, 512 }
 0x177   : > { %p793_p12 = scmp.lt.s32.totalorder %s1168_s30, %s791_s25  ;;  %p794_p0 = scmp.lt.s32.totalorder %s792_s21, %s786_s22 }
 0x178   : > { %p789_p10 = pneg %p788_p6 }
 0x179   : > { %p795_p8 = por %p794_p0, %p793_p12 }
 0x17b   : > { %p796_p11 = pnand %p795_p8, %p789_p10 }
 0x17d   : > { %799 = shalt.err (!%p796_p11)
}
 0x17e   : > { %s800_s0 = scalar_lea.hbm %s1166_s7, 256  ;;  %s804_s8 = scalar_lea.hbm %s1235_s2, 512 }
 0x17f   : > { %p801_p13 = scmp.ne.s32.totalorder %s1166_s7, %s800_s0  ;;  %p805_p1 = scmp.lt.u32.totalorder %s1166_s7, %s1235_s2 }
 0x180   : > { %p806_p5 = scmp.lt.u32.totalorder %s804_s8, %s800_s0  ;;  %p808_p2 = scmp.lt.u32.totalorder %s800_s0, %s1166_s7 }
 0x181   : > { %p802_p7 = pnand %p801_p13, %p1268_p3 }
 0x182   : > { %p807_p4 = por %p806_p5, %p805_p1 }
 0x183   : > { %p803_p9 = pneg %p802_p7 }
 0x184   : > { %p809_p6 = por %p808_p2, %p807_p4 }
 0x186   : > { %p810_p10 = pnand %p809_p6, %p803_p9 }
 0x188   : > { %813 = shalt.err (!%p810_p10)
}
 0x189   : > { %s921_s17 = smov 128   ;;  %s922_s23 = smov 256  }
 0x18a   : > { %s923_s26 = smov 8  }
 0x18b   : > { %595 = dma.vmem_to_hbm [thread:$0]  (%p1268_p3), %s1168_s30, 256, %s1166_s7, %s1172_s15, %s921_s17, %s922_s23, %s923_s26  }
 0x18c PF: > { %s1269_s28 = sld [smem:[#allocation12_spill]]  ;;  %p612_p12 = scmp.ge.s32.totalorder %s912_s19, 2 }
 0x18d   : > { %s441_s29 = sand.u32 1, %s872_s9  }
 0x18e   : > { %s442_s5 = scalar_lea.sflag [#allocation4], %s441_s29 }
 0x192   : > { %p1270_p0 = scmp.ne.s32.totalorder %s1269_s28, 0 }
 0x194   : > { %p606_p8 = pnand %p612_p12, %p1270_p0 }
 0x196   : > { %867 = dma.done.wait (!%p606_p8), %s442_s5, 256  }
 0x197   : > { %869 = vsyncadd (!%p606_p8), %s442_s5, 4294967040  ;;  %s19_s19 = sadd.s32 1, %s912_s19   ;;  %s1271_s15 = sld [smem:[#allocation11_spill]] }
 0x198   : > { %p16_p11 = scmp.ge.s32.totalorder %s19_s19, 20   ;;  %s1272_s17 = sld [smem:[#allocation13_spill]] }
 0x199   : > { %s1273_s27 = sld [smem:[#allocation14_spill]]  ;;  %s1274_s9 = smov %s876_s10 }
 0x19a   : > { %s1275_s10 = smov %s880_s11  ;;  %s1276_s11 = smov %s1089_s3 }
 0x19b   : > { %s1277_s12 = smov %s888_s13  ;;  %s1278_s13 = smov %s892_s14 }
 0x19c   : > { %s1279_s14 = smov %s1094_s24  ;;  %s1280_s16 = smov %s908_s18 }
 0x19d   :  { %18 = sbr.rel (!%p16_p11) target bundleno = 12 (0xc), region = 87 }
 0x19f   : > { %s1281_s18 = smov %s1273_s27 }
 0x1a4   :  { %447 = vsyncpa [#allocation3], 1 }
 0x1a5   :  { %449 = vsyncpa [#allocation3 + $0x1], 1 }
 0x1a6   :  { %450 = vsyncpa [#allocation6], 1 }
 0x1a7   :  { %452 = vsyncpa [#allocation6 + $0x1], 1 }
 0x1a8   :  { %453 = vsyncpa [#allocation4], 1 }
 0x1a9   :  { %455 = vsyncpa [#allocation4 + $0x1], 1 }

</bundles_post_ra>
